<compile_context>
chip_gen: v7x
topology: tpu7x:2x2x1
jax: 0.10.0
libtpu: 0.0.40
codegen_flags: <defaults>
</compile_context>

<pallas_src>
import functools

import jax
import jax.numpy as jnp
from jax.experimental import pallas as pl
from jax.experimental.pallas import tpu as pltpu

LEAKY_SLOPE = 0.01   # PyTorch nn.LeakyReLU default
BN_EPS = 1e-5        # PyTorch nn.BatchNorm3d default


# ----------------------------------------------------------------------------
# Pallas kernel (one (channels, TILE_S) spatial tile, channels on sublanes,
# spatial on lanes):
#   s   = leaky_relu(Wg @ g + Wx @ x + (bg + bx))     # VPU broadcast-FMAs
#   psi = sigmoid(Wpsi @ s + bpsi)                    # sublane reduce + EUP
#   out = x * psi
# ----------------------------------------------------------------------------
def _attention_gate_kernel(g_ref, x_ref, wg_ref, wx_ref, wpsi_ref, bs_ref,
                           bpsi_ref, out_ref):
    f32 = jnp.float32
    g_t = g_ref[0].astype(f32)                 # (F_g, TILE_S)
    x_t = x_ref[0].astype(f32)                 # (F_l, TILE_S)
    wg = wg_ref[...].astype(f32)               # (F_int, F_g)
    wx = wx_ref[...].astype(f32)               # (F_int, F_l)

    f_g = g_t.shape[0]
    f_l = x_t.shape[0]

    # Channel mixing on the VPU: channel dims (4 / 8 / 1) are far too small
    # for the MXU, so unroll broadcast-FMAs over the channel axis instead.
    s = bs_ref[...].astype(f32)                # (F_int, 1) -> broadcasts on lanes
    for c in range(f_g):
        s = s + wg[:, c:c + 1] * g_t[c:c + 1, :]
    for c in range(f_l):
        s = s + wx[:, c:c + 1] * x_t[c:c + 1, :]

    # LeakyReLU (slope < 1  =>  max(s, slope * s)).
    s = jnp.maximum(s, LEAKY_SLOPE * s)        # (F_int, TILE_S)

    # psi = sigmoid(Wpsi @ s + bpsi): sublane reduce (XLU), exp + recip (EUP).
    p = jnp.sum(wpsi_ref[...].astype(f32) * s, axis=0, keepdims=True)
    p = p + bpsi_ref[...].astype(f32)          # (1, TILE_S)
    psi = pl.reciprocal(1.0 + jnp.exp(-p), approx=False)

    out_ref[0] = (x_t * psi).astype(out_ref.dtype)   # broadcast over F_l sublanes


def _fold_bn(conv_w, conv_b, gamma, beta, running_mean, running_var):
    """Fold eval-mode BatchNorm into a 1x1x1 conv.

    conv_w: (C_out, C_in) squeezed conv weight, conv_b: (C_out,)
    Returns (W_eff: (C_out, C_in), b_eff: (C_out,)).
    """
    scale = gamma / jnp.sqrt(running_var + BN_EPS)        # (C_out,)
    w_eff = conv_w * scale[:, None]                       # (C_out, C_in)
    b_eff = (conv_b - running_mean) * scale + beta        # (C_out,)
    return w_eff, b_eff


@functools.partial(jax.jit, static_argnames=("tile_s",))
def attention_block(g, x, params, tile_s=4096):
    """g: (N, F_g, D, H, W), x: (N, F_l, D, H, W)  ->  (N, F_l, D, H, W)."""
    N, F_g, D, H, W = g.shape
    F_l = x.shape[1]
    S = D * H * W

    # Fold BN into the pointwise convs (plain-JAX glue on tiny arrays).
    wg_eff, bg_eff = _fold_bn(params["wg"], params["bg"], params["bn_g_gamma"],
                              params["bn_g_beta"], params["bn_g_mean"],
                              params["bn_g_var"])
    wx_eff, bx_eff = _fold_bn(params["wx"], params["bx"], params["bn_x_gamma"],
                              params["bn_x_beta"], params["bn_x_mean"],
                              params["bn_x_var"])
    wp_eff, bp_eff = _fold_bn(params["wpsi"], params["bpsi"],
                              params["bn_p_gamma"], params["bn_p_beta"],
                              params["bn_p_mean"], params["bn_p_var"])
    F_int = wg_eff.shape[0]

    # Fuse the two input branches' biases; weights stay (C_out, C_in).
    wg_eff = wg_eff.astype(jnp.float32)
    wx_eff = wx_eff.astype(jnp.float32)
    bs_col = (bg_eff + bx_eff).reshape(F_int, 1).astype(jnp.float32)
    wpsi_col = wp_eff.reshape(F_int, 1).astype(jnp.float32)
    bpsi_col = bp_eff.reshape(1, 1).astype(jnp.float32)

    # (N, C, D, H, W) -> (N, C, S): free reshape, no transpose, no extra HBM pass.
    g3 = g.reshape(N, F_g, S)
    x3 = x.reshape(N, F_l, S)

    # Lane-aligned spatial tiling; pad S up to a multiple of the tile if needed.
    LANE = 128
    s_ceil = -(-S // LANE) * LANE
    t = max(LANE, min(int(tile_s), s_ceil))
    t = -(-t // LANE) * LANE
    S_pad = -(-S // t) * t
    if S_pad != S:
        pad = ((0, 0), (0, 0), (0, S_pad - S))
        g3 = jnp.pad(g3, pad)
        x3 = jnp.pad(x3, pad)

    grid = (N, S_pad // t)
    const = lambda n, s: (0, 0)   # weights/biases: VMEM-resident, fetched once

    out3 = pl.pallas_call(
        _attention_gate_kernel,
        out_shape=jax.ShapeDtypeStruct((N, F_l, S_pad), x.dtype),
        grid_spec=pltpu.PrefetchScalarGridSpec(
            num_scalar_prefetch=0,
            grid=grid,
            in_specs=[
                pl.BlockSpec((1, F_g, t), lambda n, s: (n, 0, s)),   # g tile
                pl.BlockSpec((1, F_l, t), lambda n, s: (n, 0, s)),   # x tile
                pl.BlockSpec((F_int, F_g), const),                   # Wg
                pl.BlockSpec((F_int, F_l), const),                   # Wx
                pl.BlockSpec((F_int, 1), const),                     # Wpsi column
                pl.BlockSpec((F_int, 1), const),                     # bg + bx
                pl.BlockSpec((1, 1), const),                         # bpsi
            ],
            out_specs=pl.BlockSpec((1, F_l, t), lambda n, s: (n, 0, s)),
        ),
        compiler_params=pltpu.CompilerParams(
            dimension_semantics=("parallel", "parallel")),
    )(g3, x3, wg_eff, wx_eff, wpsi_col, bs_col, bpsi_col)

    if S_pad != S:
        out3 = out3[:, :, :S]
    return out3.reshape(N, F_l, D, H, W)


# ----------------------------------------------------------------------------
# Pure-JAX reference (same semantics) for a correctness check.
# ----------------------------------------------------------------------------
def attention_block_ref(g, x, params):
    def conv_bn(inp, w, b, gamma, beta, mean, var):
        # 1x1x1 conv over NCDHW == einsum over the channel axis.
        y = jnp.einsum("ncdhw,oc->nodhw", inp, w) + b[None, :, None, None, None]
        scale = gamma / jnp.sqrt(var + BN_EPS)
        return (y - mean[None, :, None, None, None]) * \
            scale[None, :, None, None, None] + beta[None, :, None, None, None]

    g1 = conv_bn(g, params["wg"], params["bg"], params["bn_g_gamma"],
                 params["bn_g_beta"], params["bn_g_mean"], params["bn_g_var"])
    x1 = conv_bn(x, params["wx"], params["bx"], params["bn_x_gamma"],
                 params["bn_x_beta"], params["bn_x_mean"], params["bn_x_var"])
    s = g1 + x1
    s = jnp.where(s >= 0, s, LEAKY_SLOPE * s)
    p = conv_bn(s, params["wpsi"], params["bpsi"], params["bn_p_gamma"],
                params["bn_p_beta"], params["bn_p_mean"], params["bn_p_var"])
    psi = jax.nn.sigmoid(p)
    return x * psi


if __name__ == "__main__":
    # Small shapes consistent with the module: N=2, F_g=F_l=4, F_int=8.
    N, F_g, F_l, F_int = 2, 4, 4, 8

    key = jax.random.PRNGKey(0)
    kg, kx, kwg, kbg, kwx, kbx, kwp, kbp, kg2, kx2 = jax.random.split(key, 10)

    params = {
        # conv weights squeezed from (C_out, C_in, 1, 1, 1) -> (C_out, C_in)
        "wg": jax.random.normal(kwg, (F_int, F_g), jnp.float32) * 0.1,
        "bg": jax.random.normal(kbg, (F_int,), jnp.float32) * 0.1,
        "wx": jax.random.normal(kwx, (F_int, F_l), jnp.float32) * 0.1,
        "bx": jax.random.normal(kbx, (F_int,), jnp.float32) * 0.1,
        "wpsi": jax.random.normal(kwp, (1, F_int), jnp.float32) * 0.1,
        "bpsi": jax.random.normal(kbp, (1,), jnp.float32) * 0.1,
        # BatchNorm3d params at PyTorch default init (eval mode).
        "bn_g_gamma": jnp.ones((F_int,), jnp.float32),
        "bn_g_beta": jnp.zeros((F_int,), jnp.float32),
        "bn_g_mean": jnp.zeros((F_int,), jnp.float32),
        "bn_g_var": jnp.ones((F_int,), jnp.float32),
        "bn_x_gamma": jnp.ones((F_int,), jnp.float32),
        "bn_x_beta": jnp.zeros((F_int,), jnp.float32),
        "bn_x_mean": jnp.zeros((F_int,), jnp.float32),
        "bn_x_var": jnp.ones((F_int,), jnp.float32),
        "bn_p_gamma": jnp.ones((1,), jnp.float32),
        "bn_p_beta": jnp.zeros((1,), jnp.float32),
        "bn_p_mean": jnp.zeros((1,), jnp.float32),
        "bn_p_var": jnp.ones((1,), jnp.float32),
    }

    # --- Test 1: lane-aligned spatial size (D=H=W=8, S=512), default tile. ---
    D = H = W = 8
    g = jax.random.normal(kg, (N, F_g, D, H, W), jnp.float32)
    x = jax.random.normal(kx, (N, F_l, D, H, W), jnp.float32)

    out = jax.block_until_ready(attention_block(g, x, params))
    ref = attention_block_ref(g, x, params)
    assert out.shape == (N, F_l, D, H, W)
    assert jnp.allclose(out, ref, atol=1e-5, rtol=1e-5), "mismatch vs reference"

    # Same shapes, smaller tile -> multi-tile grid along the spatial axis.
    out_t = jax.block_until_ready(attention_block(g, x, params, tile_s=128))
    assert jnp.allclose(out_t, ref, atol=1e-5, rtol=1e-5), "tiled mismatch"

    # --- Test 2: ragged spatial size (D,H,W = 5,6,7; S=210) -> padding path. ---
    D2, H2, W2 = 5, 6, 7
    g2 = jax.random.normal(kg2, (N, F_g, D2, H2, W2), jnp.float32)
    x2 = jax.random.normal(kx2, (N, F_l, D2, H2, W2), jnp.float32)

    out2 = jax.block_until_ready(attention_block(g2, x2, params))
    ref2 = attention_block_ref(g2, x2, params)
    assert out2.shape == (N, F_l, D2, H2, W2)
    assert jnp.allclose(out2, ref2, atol=1e-5, rtol=1e-5), "ragged mismatch"

    print("KERNEL_OK")
</pallas_src>

<mosaic_0001>
module attributes {stable_mosaic.version = 11 : i64} {
  func.func @_attention_gate_kernel(%arg0: i32, %arg1: i32, %arg2: memref<1x4x512xf32, #tpu.memory_space<vmem>>, %arg3: memref<1x4x512xf32, #tpu.memory_space<vmem>>, %arg4: memref<8x4xf32, #tpu.memory_space<vmem>>, %arg5: memref<8x4xf32, #tpu.memory_space<vmem>>, %arg6: memref<8x1xf32, #tpu.memory_space<vmem>>, %arg7: memref<8x1xf32, #tpu.memory_space<vmem>>, %arg8: memref<1x1xf32, #tpu.memory_space<vmem>>, %arg9: memref<1x4x512xf32, #tpu.memory_space<vmem>>) attributes {dimension_semantics = [#tpu.dimension_semantics<parallel>, #tpu.dimension_semantics<parallel>], iteration_bounds = array<i64: 2, 1>, scalar_prefetch = 0 : i64, scratch_operands = 0 : i64, tpu.core_type = #tpu.core_type<tc>, window_params = [{transform_indices = @transform_0, window_bounds = array<i64: 1, 4, 512>}, {transform_indices = @transform_1, window_bounds = array<i64: 1, 4, 512>}, {pipeline_mode = #tpu.pipeline_mode<synchronous>, transform_indices = @transform_2, window_bounds = array<i64: 8, 4>}, {pipeline_mode = #tpu.pipeline_mode<synchronous>, transform_indices = @transform_3, window_bounds = array<i64: 8, 4>}, {pipeline_mode = #tpu.pipeline_mode<synchronous>, transform_indices = @transform_4, window_bounds = array<i64: 8, 1>}, {pipeline_mode = #tpu.pipeline_mode<synchronous>, transform_indices = @transform_5, window_bounds = array<i64: 8, 1>}, {pipeline_mode = #tpu.pipeline_mode<synchronous>, transform_indices = @transform_6, window_bounds = array<i64: 1, 1>}, {transform_indices = @transform_7, window_bounds = array<i64: 1, 4, 512>}]} {
    %c0 = arith.constant 0 : index
    %c0_0 = arith.constant 0 : index
    %c0_1 = arith.constant 0 : index
    %0 = vector.load %arg2[%c0, %c0_0, %c0_1] : memref<1x4x512xf32, #tpu.memory_space<vmem>>, vector<1x4x512xf32>
    %1 = vector.shape_cast %0 : vector<1x4x512xf32> to vector<4x512xf32>
    %c0_2 = arith.constant 0 : index
    %c0_3 = arith.constant 0 : index
    %c0_4 = arith.constant 0 : index
    %2 = vector.load %arg3[%c0_2, %c0_3, %c0_4] : memref<1x4x512xf32, #tpu.memory_space<vmem>>, vector<1x4x512xf32>
    %3 = vector.shape_cast %2 : vector<1x4x512xf32> to vector<4x512xf32>
    %c0_5 = arith.constant 0 : index
    %c0_6 = arith.constant 0 : index
    %4 = vector.load %arg4[%c0_5, %c0_6] : memref<8x4xf32, #tpu.memory_space<vmem>>, vector<8x4xf32>
    %c0_7 = arith.constant 0 : index
    %c0_8 = arith.constant 0 : index
    %5 = vector.load %arg5[%c0_7, %c0_8] : memref<8x4xf32, #tpu.memory_space<vmem>>, vector<8x4xf32>
    %c0_9 = arith.constant 0 : index
    %c0_10 = arith.constant 0 : index
    %6 = vector.load %arg7[%c0_9, %c0_10] : memref<8x1xf32, #tpu.memory_space<vmem>>, vector<8x1xf32>
    %7 = vector.extract_strided_slice %4 {offsets = [0, 0], sizes = [8, 1], strides = [1, 1]} : vector<8x4xf32> to vector<8x1xf32>
    %8 = vector.extract_strided_slice %1 {offsets = [0, 0], sizes = [1, 512], strides = [1, 1]} : vector<4x512xf32> to vector<1x512xf32>
    %9 = vector.broadcast %7 : vector<8x1xf32> to vector<8x512xf32>
    %10 = vector.broadcast %8 : vector<1x512xf32> to vector<8x512xf32>
    %11 = arith.mulf %9, %10 : vector<8x512xf32>
    %12 = vector.broadcast %6 : vector<8x1xf32> to vector<8x512xf32>
    %13 = arith.addf %12, %11 : vector<8x512xf32>
    %14 = vector.extract_strided_slice %4 {offsets = [0, 1], sizes = [8, 1], strides = [1, 1]} : vector<8x4xf32> to vector<8x1xf32>
    %15 = vector.extract_strided_slice %1 {offsets = [1, 0], sizes = [1, 512], strides = [1, 1]} : vector<4x512xf32> to vector<1x512xf32>
    %16 = vector.broadcast %14 : vector<8x1xf32> to vector<8x512xf32>
    %17 = vector.broadcast %15 : vector<1x512xf32> to vector<8x512xf32>
    %18 = arith.mulf %16, %17 : vector<8x512xf32>
    %19 = arith.addf %13, %18 : vector<8x512xf32>
    %20 = vector.extract_strided_slice %4 {offsets = [0, 2], sizes = [8, 1], strides = [1, 1]} : vector<8x4xf32> to vector<8x1xf32>
    %21 = vector.extract_strided_slice %1 {offsets = [2, 0], sizes = [1, 512], strides = [1, 1]} : vector<4x512xf32> to vector<1x512xf32>
    %22 = vector.broadcast %20 : vector<8x1xf32> to vector<8x512xf32>
    %23 = vector.broadcast %21 : vector<1x512xf32> to vector<8x512xf32>
    %24 = arith.mulf %22, %23 : vector<8x512xf32>
    %25 = arith.addf %19, %24 : vector<8x512xf32>
    %26 = vector.extract_strided_slice %4 {offsets = [0, 3], sizes = [8, 1], strides = [1, 1]} : vector<8x4xf32> to vector<8x1xf32>
    %27 = vector.extract_strided_slice %1 {offsets = [3, 0], sizes = [1, 512], strides = [1, 1]} : vector<4x512xf32> to vector<1x512xf32>
    %28 = vector.broadcast %26 : vector<8x1xf32> to vector<8x512xf32>
    %29 = vector.broadcast %27 : vector<1x512xf32> to vector<8x512xf32>
    %30 = arith.mulf %28, %29 : vector<8x512xf32>
    %31 = arith.addf %25, %30 : vector<8x512xf32>
    %32 = vector.extract_strided_slice %5 {offsets = [0, 0], sizes = [8, 1], strides = [1, 1]} : vector<8x4xf32> to vector<8x1xf32>
    %33 = vector.extract_strided_slice %3 {offsets = [0, 0], sizes = [1, 512], strides = [1, 1]} : vector<4x512xf32> to vector<1x512xf32>
    %34 = vector.broadcast %32 : vector<8x1xf32> to vector<8x512xf32>
    %35 = vector.broadcast %33 : vector<1x512xf32> to vector<8x512xf32>
    %36 = arith.mulf %34, %35 : vector<8x512xf32>
    %37 = arith.addf %31, %36 : vector<8x512xf32>
    %38 = vector.extract_strided_slice %5 {offsets = [0, 1], sizes = [8, 1], strides = [1, 1]} : vector<8x4xf32> to vector<8x1xf32>
    %39 = vector.extract_strided_slice %3 {offsets = [1, 0], sizes = [1, 512], strides = [1, 1]} : vector<4x512xf32> to vector<1x512xf32>
    %40 = vector.broadcast %38 : vector<8x1xf32> to vector<8x512xf32>
    %41 = vector.broadcast %39 : vector<1x512xf32> to vector<8x512xf32>
    %42 = arith.mulf %40, %41 : vector<8x512xf32>
    %43 = arith.addf %37, %42 : vector<8x512xf32>
    %44 = vector.extract_strided_slice %5 {offsets = [0, 2], sizes = [8, 1], strides = [1, 1]} : vector<8x4xf32> to vector<8x1xf32>
    %45 = vector.extract_strided_slice %3 {offsets = [2, 0], sizes = [1, 512], strides = [1, 1]} : vector<4x512xf32> to vector<1x512xf32>
    %46 = vector.broadcast %44 : vector<8x1xf32> to vector<8x512xf32>
    %47 = vector.broadcast %45 : vector<1x512xf32> to vector<8x512xf32>
    %48 = arith.mulf %46, %47 : vector<8x512xf32>
    %49 = arith.addf %43, %48 : vector<8x512xf32>
    %50 = vector.extract_strided_slice %5 {offsets = [0, 3], sizes = [8, 1], strides = [1, 1]} : vector<8x4xf32> to vector<8x1xf32>
    %51 = vector.extract_strided_slice %3 {offsets = [3, 0], sizes = [1, 512], strides = [1, 1]} : vector<4x512xf32> to vector<1x512xf32>
    %52 = vector.broadcast %50 : vector<8x1xf32> to vector<8x512xf32>
    %53 = vector.broadcast %51 : vector<1x512xf32> to vector<8x512xf32>
    %54 = arith.mulf %52, %53 : vector<8x512xf32>
    %55 = arith.addf %49, %54 : vector<8x512xf32>
    %cst = arith.constant 0.00999999977 : f32
    %56 = vector.broadcast %cst : f32 to vector<8x512xf32>
    %57 = arith.mulf %56, %55 : vector<8x512xf32>
    %58 = arith.maximumf %55, %57 : vector<8x512xf32>
    %c0_11 = arith.constant 0 : index
    %c0_12 = arith.constant 0 : index
    %59 = vector.load %arg6[%c0_11, %c0_12] : memref<8x1xf32, #tpu.memory_space<vmem>>, vector<8x1xf32>
    %60 = vector.broadcast %59 : vector<8x1xf32> to vector<8x512xf32>
    %61 = arith.mulf %60, %58 : vector<8x512xf32>
    %cst_13 = arith.constant dense<0.000000e+00> : vector<512xf32>
    %62 = vector.multi_reduction <add>, %61, %cst_13 [0] : vector<8x512xf32> to vector<512xf32>
    %63 = vector.shape_cast %62 : vector<512xf32> to vector<1x512xf32>
    %c0_14 = arith.constant 0 : index
    %c0_15 = arith.constant 0 : index
    %64 = vector.load %arg8[%c0_14, %c0_15] : memref<1x1xf32, #tpu.memory_space<vmem>>, vector<1x1xf32>
    %65 = vector.broadcast %64 : vector<1x1xf32> to vector<1x512xf32>
    %66 = arith.addf %63, %65 : vector<1x512xf32>
    %cst_16 = arith.constant 0.000000e+00 : f32
    %67 = vector.broadcast %cst_16 : f32 to vector<1x512xf32>
    %68 = arith.subf %67, %66 : vector<1x512xf32>
    %69 = math.exp %68 : vector<1x512xf32>
    %cst_17 = arith.constant 1.000000e+00 : f32
    %70 = vector.broadcast %cst_17 : f32 to vector<1x512xf32>
    %71 = arith.addf %70, %69 : vector<1x512xf32>
    %72 = tpu.reciprocal %71 : vector<1x512xf32> -> vector<1x512xf32>
    %73 = vector.broadcast %72 : vector<1x512xf32> to vector<4x512xf32>
    %74 = arith.mulf %3, %73 : vector<4x512xf32>
    %c0_18 = arith.constant 0 : index
    %c0_19 = arith.constant 0 : index
    %c0_20 = arith.constant 0 : index
    %75 = vector.load %arg9[%c0_18, %c0_19, %c0_20] : memref<1x4x512xf32, #tpu.memory_space<vmem>>, vector<1x4x512xf32>
    %76 = vector.shape_cast %75 : vector<1x4x512xf32> to vector<4x512xf32>
    %77 = vector.shape_cast %74 : vector<4x512xf32> to vector<1x4x512xf32>
    tpu.vector_store %arg9[%c0_18, %c0_19, %c0_20], %77 {strides = array<i32>} : memref<1x4x512xf32, #tpu.memory_space<vmem>>, vector<1x4x512xf32>,
    return
  }
  func.func @transform_0(%arg0: i32, %arg1: i32) -> (i32, i32, i32) {
    %c0_i32 = arith.constant 0 : i32
    %c0_i32_0 = arith.constant 0 : i32
    return %arg0, %c0_i32, %arg1 : i32, i32, i32
  }
  func.func @transform_1(%arg0: i32, %arg1: i32) -> (i32, i32, i32) {
    %c0_i32 = arith.constant 0 : i32
    %c0_i32_0 = arith.constant 0 : i32
    return %arg0, %c0_i32, %arg1 : i32, i32, i32
  }
  func.func @transform_2(%arg0: i32, %arg1: i32) -> (i32, i32) {
    %c0_i32 = arith.constant 0 : i32
    %c0_i32_0 = arith.constant 0 : i32
    %c0_i32_1 = arith.constant 0 : i32
    return %c0_i32, %c0_i32_0 : i32, i32
  }
  func.func @transform_3(%arg0: i32, %arg1: i32) -> (i32, i32) {
    %c0_i32 = arith.constant 0 : i32
    %c0_i32_0 = arith.constant 0 : i32
    %c0_i32_1 = arith.constant 0 : i32
    return %c0_i32, %c0_i32_0 : i32, i32
  }
  func.func @transform_4(%arg0: i32, %arg1: i32) -> (i32, i32) {
    %c0_i32 = arith.constant 0 : i32
    %c0_i32_0 = arith.constant 0 : i32
    %c0_i32_1 = arith.constant 0 : i32
    return %c0_i32, %c0_i32_0 : i32, i32
  }
  func.func @transform_5(%arg0: i32, %arg1: i32) -> (i32, i32) {
    %c0_i32 = arith.constant 0 : i32
    %c0_i32_0 = arith.constant 0 : i32
    %c0_i32_1 = arith.constant 0 : i32
    return %c0_i32, %c0_i32_0 : i32, i32
  }
  func.func @transform_6(%arg0: i32, %arg1: i32) -> (i32, i32) {
    %c0_i32 = arith.constant 0 : i32
    %c0_i32_0 = arith.constant 0 : i32
    %c0_i32_1 = arith.constant 0 : i32
    return %c0_i32, %c0_i32_0 : i32, i32
  }
  func.func @transform_7(%arg0: i32, %arg1: i32) -> (i32, i32, i32) {
    %c0_i32 = arith.constant 0 : i32
    %c0_i32_0 = arith.constant 0 : i32
    return %arg0, %c0_i32, %arg1 : i32, i32, i32
  }
}

</mosaic_0001>

<bundles_post_ra>
// kernel: attention_block.1
= control target key start
LH: loop header
LB: loop body
LE: loop exit
PB: predicated region body
PF: predicated region fallthrough
CT: control target
= control target key end

     0   :  { %s1092_s26 = smov 0   ;;  %s1094_s27 = smov 0   ;;  %s1238_s0 = inlined_call_operand.vmem [shape: f32[2,4,512], index: 0, kind: input, shape index: {}]   ;;  %s1239_s1 = inlined_call_operand.vmem [shape: f32[2,4,512], index: 1, kind: input, shape index: {}]   ;;  %s1240_s2 = inlined_call_operand.vmem [shape: f32[8,4], index: 2, kind: input, shape index: {}]   ;;  %s1241_s3 = inlined_call_operand.vmem [shape: f32[8,4], index: 3, kind: input, shape index: {}]   ;;  %s1242_s4 = inlined_call_operand.vmem [shape: f32[8,1], index: 4, kind: input, shape index: {}]   ;;  %s1243_s5 = inlined_call_operand.vmem [shape: f32[8,1], index: 5, kind: input, shape index: {}]   ;;  %s1244_s6 = inlined_call_operand.<no memory space> [shape: f32[1,1], index: 6, kind: input, shape index: {}]   ;;  %s1245_s7 = inlined_call_operand.vmem [shape: f32[2,4,512], index: 7, kind: output, shape index: {}]  }
   0x1   :  { %v12_v0 = vstv %s1244_s6  ;;  %s1096_s28 = smov 0  }
   0x2   :  { %13 = vst [vmem:[#allocation2] sm:$0x1] %v12_v0 }
   0x3 LB: > { %s31_s6 = sadd.s32 1, %s1039_s27  ;;  %p955_p0 = scmp.ge.s32.totalorder %s1043_s28, 1  ;;  %s1043_s28 = sphi %s1096_s28, %s19_s28   ;;  %s1039_s27 = sphi %s1094_s27, %s1247_s27   ;;  %s1035_s26 = sphi %s1092_s26, %s1246_s26  }
   0x4   : > { %p33_p1 = scmp.ge.s32.totalorder %s31_s6, 2  ;;  %p277_p2 = scmp.lt.s32.totalorder %s1043_s28, 3 }
   0x6   : > { %s1249_s6 = smov (%p33_p1, %s31_s6), 0  ;;  %p278_p3 = pnand %p955_p0, %p277_p2 }
   0x7   : > { %v360_v1 = vld [vmem:[%s1240_s2] sm:$0xff] (!%p278_p3)  ;;  %v1045_v2 = vmov (!%p278_p3), 1   ;;  %v1046_v3 = vmov (!%p278_p3), 0   ;;  %v1047_v5 = vmov (!%p278_p3), 2   ;;  %v1048_v7 = vmov (!%p278_p3), 3   ;;  %p327_p4 = scmp.lt.s32.totalorder (!%p278_p3), %s1035_s26, 1 }
   0x8   : > { %281 = sbr.rel (%p278_p3) target bundleno = 217 (0xd9), region = 48  ;;  %996 = vset.pattern.permute.xlu1 (!%p278_p3), %v1045_v2  ;;  %995 = vset.pattern.permute.xlu0 (!%p278_p3), %v1046_v3  ;;  %v362_v4 = vld [vmem:[%s1243_s5] sm:$0xff] (!%p278_p3)  ;;  %v370_v10 = vlaneseq (!%p278_p3) }
   0x9   : > { %420 = vperm.xlu1 (!%p278_p3), %996, %v360_v1   ;;  %365 = vperm.xlu0 (!%p278_p3), %995, %v360_v1   ;;  %v361_v6 = vld [vmem:[%s1241_s3] sm:$0xff] (!%p278_p3) }
   0xa   : > { %v800_v8 = vld [vmem:[#allocation2] sm:$0x1] (!%p278_p3)  ;;  %v371_v11 = vshrl.u32 (!%p278_p3), %v370_v10, 7 }
   0xb   : > { %v766_v9 = vld [vmem:[%s1242_s4] sm:$0xff] (!%p278_p3) }
   0xc   : > { %v425_v12 = vsub.s32 (!%p278_p3), 1, %v371_v11  ;;  %v429_v13 = vsub.s32 (!%p278_p3), 5, %v371_v11  ;;  %v1132_v14 = vsub.s32 (!%p278_p3), 0, %v371_v11  ;;  %v376_v17 = vsub.s32 (!%p278_p3), 4, %v371_v11 }
   0xd   : > { %997 = vset.pattern.permute.xlu1 (!%p278_p3), %v1047_v5  ;;  %412 = vperm.xlu0 (!%p278_p3), %995, %v362_v4   ;;  %v1136_v26 = vsub.s32 (!%p278_p3), 2, %v371_v11  ;;  %v1138_v27 = vsub.s32 (!%p278_p3), 6, %v371_v11  ;;  %v1144_v28 = vsub.s32 (!%p278_p3), 3, %v371_v11  ;;  %v1146_v29 = vsub.s32 (!%p278_p3), 7, %v371_v11 }
   0xe   : > { %468 = vperm.xlu1 (!%p278_p3), %997, %v360_v1  }
   0xf   : > { %s1251_s26 = smov (!%p327_p4, %s1035_s26), 1 }
  0x10   : > { %s1126_s14 = sshll.u32 %s1251_s26, 4 }
  0x11   : > { %998 = vset.pattern.permute.xlu0 %v1048_v7  ;;  %s334_s17 = scalar_lea.vmem %s1238_s0, %s1126_s14  ;;  %s344_s20 = scalar_lea.vmem %s1239_s1, %s1126_s14 }
  0x12   : > { %999 = vset.pattern.permute.xlu1 %v1046_v3  ;;  %516 = vperm.xlu0 %998, %v360_v1   ;;  %v356_v15 = vld [vmem:[%s334_s17] sm:$0xff]  ;;  %v357_v16 = vld [vmem:[%s334_s17 + $0x8] sm:$0xff]  ;;  %s354_s23 = scalar_lea.vmem %s1245_s7, %s1126_s14 }
  0x13   : > { %565 = vperm.xlu1 %999, %v361_v6   ;;  %v426_v18 = vrot.slane %v356_v15, %v425_v12  ;;  %v430_v19 = vrot.slane %v356_v15, %v429_v13  ;;  %v434_v20 = vrot.slane %v357_v16, %v425_v12  ;;  %v438_v21 = vrot.slane %v357_v16, %v429_v13  ;;  %v1152_v38 = vld [vmem:[%s344_s20] sm:$0xff]  ;;  %v1154_v39 = vld [vmem:[%s344_s20 + $0x8] sm:$0xff] }
  0x14   : > { %v373_v22 = vrot.slane %v356_v15, %v1132_v14  ;;  %v377_v23 = vrot.slane %v356_v15, %v376_v17  ;;  %v381_v24 = vrot.slane %v357_v16, %v1132_v14  ;;  %v385_v25 = vrot.slane %v357_v16, %v376_v17 }
  0x15   : > { %v446_v30 = vrot.slane %v426_v18, %v425_v12  ;;  %v450_v31 = vrot.slane %v430_v19, %v425_v12  ;;  %v454_v32 = vrot.slane %v434_v20, %v425_v12  ;;  %v458_v33 = vrot.slane %v438_v21, %v425_v12 }
  0x16   : > { %1001 = vset.pattern.permute.xlu0 %v1047_v5  ;;  %v393_v34 = vrot.slane %v373_v22, %v1132_v14  ;;  %v397_v35 = vrot.slane %v377_v23, %v1132_v14  ;;  %v401_v36 = vrot.slane %v381_v24, %v1132_v14  ;;  %v405_v37 = vrot.slane %v385_v25, %v1132_v14 }
  0x17   : > { %1000 = vset.pattern.permute.xlu1 %v1045_v2  ;;  %663 = vperm.xlu0 %1001, %v361_v6   ;;  %v474_v40 = vrot.slane %v356_v15, %v1136_v26  ;;  %v478_v41 = vrot.slane %v356_v15, %v1138_v27  ;;  %v482_v42 = vrot.slane %v357_v16, %v1136_v26 }
  0x18   : > { %615 = vperm.xlu1 %1000, %v361_v6   ;;  %v486_v43 = vrot.slane %v357_v16, %v1138_v27  ;;  %v522_v44 = vrot.slane %v356_v15, %v1144_v28  ;;  %v526_v45 = vrot.slane %v356_v15, %v1146_v29  ;;  %v530_v46 = vrot.slane %v357_v16, %v1144_v28 }
  0x19   : > { %v534_v47 = vrot.slane %v357_v16, %v1146_v29  ;;  %v573_v48 = vrot.slane %v1152_v38, %v1132_v14  ;;  %v577_v49 = vrot.slane %v1152_v38, %v376_v17  ;;  %v581_v50 = vrot.slane %v1154_v39, %v1132_v14 }
  0x1a   : > { %v585_v51 = vrot.slane %v1154_v39, %v376_v17  ;;  %v621_v52 = vrot.slane %v1152_v38, %v425_v12  ;;  %v625_v53 = vrot.slane %v1152_v38, %v429_v13  ;;  %v629_v54 = vrot.slane %v1154_v39, %v425_v12 }
  0x1b   : > { %1004 = vset.pattern.permute.xlu0 %v1046_v3  ;;  %v633_v55 = vrot.slane %v1154_v39, %v429_v13  ;;  %v494_v56 = vrot.slane %v474_v40, %v1136_v26  ;;  %v498_v57 = vrot.slane %v478_v41, %v1136_v26  ;;  %v502_v58 = vrot.slane %v482_v42, %v1136_v26 }
  0x1c   : > { %1002 = vset.pattern.permute.xlu1 %v1048_v7  ;;  %803 = vperm.xlu0 %1004, %v800_v8   ;;  %v506_v59 = vrot.slane %v486_v43, %v1136_v26  ;;  %v542_v60 = vrot.slane %v522_v44, %v1144_v28  ;;  %v546_v61 = vrot.slane %v526_v45, %v1144_v28 }
  0x1d   : > { %711 = vperm.xlu1 %1002, %v361_v6   ;;  %v550_v62 = vrot.slane %v530_v46, %v1144_v28  ;;  %v554_v63 = vrot.slane %v534_v47, %v1144_v28  ;;  %v593_v2 = vrot.slane %v573_v48, %v1132_v14  ;;  %v601_v4 = vrot.slane %v581_v50, %v1132_v14 }
  0x1e   : > { %v605_v5 = vrot.slane %v585_v51, %v1132_v14  ;;  %v1186_v6 = vrot.slane %v621_v52, %v425_v12  ;;  %v1188_v7 = vrot.slane %v625_v53, %v425_v12  ;;  %v1190_v8 = vrot.slane %v629_v54, %v425_v12 }
  0x1f   : > { %v669_v16 = vrot.slane %v1152_v38, %v1136_v26  ;;  %v673_v17 = vrot.slane %v1152_v38, %v1138_v27  ;;  %v677_v18 = vrot.slane %v1154_v39, %v1136_v26  ;;  %v681_v19 = vrot.slane %v1154_v39, %v1138_v27 }
  0x21   : > { %1003 = vset.pattern.permute.xlu1 %v1046_v3  ;;  %v597_v3 = vrot.slane %v577_v49, %v1132_v14  ;;  %v689_v27 = vrot.slane %v669_v16, %v1136_v26 }
  0x22   : > { %769 = vperm.xlu1 %1003, %v766_v9   ;;  %v1192_v9 = vrot.slane %v633_v55, %v425_v12 }
  0x88   : > { %v421_v0 = vpop.permute.xlu1 %420  ;;  %v366_v1 = vpop.permute.xlu0 %365 }
  0x89   : > { %v406_v10 = vmul.f32 %v393_v34, %v366_v1  ;;  %v407_v11 = vmul.f32 %v397_v35, %v366_v1  ;;  %v408_v13 = vmul.f32 %v401_v36, %v366_v1  ;;  %v409_v15 = vmul.f32 %v405_v37, %v366_v1 }
  0x8a   : > { %v459_v20 = vmul.f32 %v446_v30, %v421_v0  ;;  %v460_v21 = vmul.f32 %v450_v31, %v421_v0  ;;  %v461_v12 = vmul.f32 %v454_v32, %v421_v0  ;;  %v462_v22 = vmul.f32 %v458_v33, %v421_v0 }
  0x8b   : > { %v693_v30 = vrot.slane %v673_v17, %v1136_v26  ;;  %v697_v31 = vrot.slane %v677_v18, %v1136_v26  ;;  %v701_v32 = vrot.slane %v681_v19, %v1136_v26  ;;  %v717_v26 = vrot.slane %v1152_v38, %v1144_v28 }
  0x8c   : > { %v413_v23 = vpop.permute.xlu0 %412 }
  0x8d   : > { %v415_v24 = vadd.f32 %v413_v23, %v406_v10  ;;  %v416_v25 = vadd.f32 %v413_v23, %v407_v11  ;;  %v417_v34 = vadd.f32 %v413_v23, %v408_v13  ;;  %v418_v35 = vadd.f32 %v413_v23, %v409_v15  ;;  %v469_v36 = vpop.permute.xlu1 %468 }
  0x8e   : > { %v507_v37 = vmul.f32 %v494_v56, %v469_v36  ;;  %v508_v40 = vmul.f32 %v498_v57, %v469_v36  ;;  %v509_v41 = vmul.f32 %v502_v58, %v469_v36  ;;  %v510_v42 = vmul.f32 %v506_v59, %v469_v36 }
  0x8f   : > { %v463_v43 = vadd.f32 %v459_v20, %v415_v24  ;;  %v464_v44 = vadd.f32 %v460_v21, %v416_v25  ;;  %v465_v45 = vadd.f32 %v461_v12, %v417_v34  ;;  %v466_v46 = vadd.f32 %v462_v22, %v418_v35 }
  0x90   : > { %v721_v13 = vrot.slane %v1152_v38, %v1146_v29 }
  0x91   : > { %v511_v33 = vadd.f32 %v507_v37, %v463_v43  ;;  %v512_v47 = vadd.f32 %v508_v40, %v464_v44  ;;  %v513_v48 = vadd.f32 %v509_v41, %v465_v45  ;;  %v514_v49 = vadd.f32 %v510_v42, %v466_v46  ;;  %v517_v50 = vpop.permute.xlu0 %516 }
  0x92   : > { %v555_v51 = vmul.f32 %v542_v60, %v517_v50  ;;  %v556_v52 = vmul.f32 %v546_v61, %v517_v50  ;;  %v557_v53 = vmul.f32 %v550_v62, %v517_v50  ;;  %v558_v54 = vmul.f32 %v554_v63, %v517_v50  ;;  %v566_v55 = vpop.permute.xlu1 %565 }
  0x93   : > { %v606_v56 = vmul.f32 %v593_v2, %v566_v55  ;;  %v607_v57 = vmul.f32 %v597_v3, %v566_v55  ;;  %v608_v58 = vmul.f32 %v601_v4, %v566_v55  ;;  %v609_v59 = vmul.f32 %v605_v5, %v566_v55 }
  0x94   : > { %v559_v0 = vadd.f32 %v555_v51, %v511_v33  ;;  %v560_v1 = vadd.f32 %v556_v52, %v512_v47  ;;  %v561_v10 = vadd.f32 %v557_v53, %v513_v48  ;;  %v562_v11 = vadd.f32 %v558_v54, %v514_v49 }
  0x95   : > { %v725_v60 = vrot.slane %v1154_v39, %v1144_v28  ;;  %v729_v61 = vrot.slane %v1154_v39, %v1146_v29  ;;  %v737_v29 = vrot.slane %v717_v26, %v1144_v28  ;;  %v741_v22 = vrot.slane %v721_v13, %v1144_v28 }
  0x96   : > { %v610_v62 = vadd.f32 %v606_v56, %v559_v0  ;;  %v611_v63 = vadd.f32 %v607_v57, %v560_v1  ;;  %v612_v2 = vadd.f32 %v608_v58, %v561_v10  ;;  %v613_v3 = vadd.f32 %v609_v59, %v562_v11  ;;  %v664_v4 = vpop.permute.xlu0 %663 }
  0x97   : > { %v616_v5 = vpop.permute.xlu1 %615  ;;  %v702_v15 = vmul.f32 %v689_v27, %v664_v4  ;;  %v703_v16 = vmul.f32 %v693_v30, %v664_v4  ;;  %v704_v17 = vmul.f32 %v697_v31, %v664_v4  ;;  %v705_v18 = vmul.f32 %v701_v32, %v664_v4 }
  0x98   : > { %v654_v19 = vmul.f32 %v1186_v6, %v616_v5  ;;  %v655_v20 = vmul.f32 %v1188_v7, %v616_v5  ;;  %v656_v21 = vmul.f32 %v1190_v8, %v616_v5  ;;  %v657_v12 = vmul.f32 %v1192_v9, %v616_v5 }
  0x99   : > { %v745_v23 = vrot.slane %v725_v60, %v1144_v28  ;;  %v749_v24 = vrot.slane %v729_v61, %v1144_v28 }
  0x9a   : > { %v658_v25 = vadd.f32 %v654_v19, %v610_v62  ;;  %v659_v34 = vadd.f32 %v655_v20, %v611_v63  ;;  %v660_v35 = vadd.f32 %v656_v21, %v612_v2  ;;  %v661_v36 = vadd.f32 %v657_v12, %v613_v3 }
  0x9b   : > { %v804_v61 = vpop.permute.xlu0 %803 }
  0x9c   : > { %v706_v37 = vadd.f32 %v702_v15, %v658_v25  ;;  %v707_v6 = vadd.f32 %v703_v16, %v659_v34  ;;  %v708_v40 = vadd.f32 %v704_v17, %v660_v35  ;;  %v709_v7 = vadd.f32 %v705_v18, %v661_v36  ;;  %v712_v41 = vpop.permute.xlu1 %711 }
  0x9d   : > { %v750_v8 = vmul.f32 %v737_v29, %v712_v41  ;;  %v751_v42 = vmul.f32 %v741_v22, %v712_v41  ;;  %v752_v9 = vmul.f32 %v745_v23, %v712_v41  ;;  %v753_v43 = vmul.f32 %v749_v24, %v712_v41 }
  0x9e   : > { %v809_v16 = vrot.slane %v804_v61, %v1132_v14 }
  0x9f   : > { %v754_v44 = vadd.f32 %v750_v8, %v706_v37  ;;  %v755_v45 = vadd.f32 %v751_v42, %v707_v6  ;;  %v756_v46 = vadd.f32 %v752_v9, %v708_v40  ;;  %v757_v27 = vadd.f32 %v753_v43, %v709_v7 }
  0xa1   : > { %v758_v30 = vmul.f32 0.01, %v754_v44  ;;  %v759_v31 = vmul.f32 0.01, %v755_v45  ;;  %v760_v28 = vmul.f32 0.01, %v756_v46  ;;  %v770_v32 = vpop.permute.xlu1 %769 }
  0xa2   : > { %v761_v33 = vmul.f32 0.01, %v757_v27 }
  0xa3   : > { %v762_v47 = vmax.f32 %v754_v44, %v758_v30  ;;  %v763_v48 = vmax.f32 %v755_v45, %v759_v31  ;;  %v764_v49 = vmax.f32 %v756_v46, %v760_v28 }
  0xa4   : > { %v765_v50 = vmax.f32 %v757_v27, %v761_v33 }
  0xa5   : > { %v772_v51 = vmul.f32 %v770_v32, %v762_v47  ;;  %v773_v52 = vmul.f32 %v770_v32, %v763_v48  ;;  %v774_v53 = vmul.f32 %v770_v32, %v764_v49 }
  0xa6   : > { %v775_v54 = vmul.f32 %v770_v32, %v765_v50 }
  0xa7   : > { %v776_v55 = vrot.slane %v772_v51, 4  ;;  %v782_v56 = vrot.slane %v773_v52, 4  ;;  %v788_v57 = vrot.slane %v774_v53, 4 }
  0xa8   : > { %v794_v58 = vrot.slane %v775_v54, 4 }
  0xa9   : > { %v777_v59 = vadd.f32 %v776_v55, %v772_v51  ;;  %v783_v0 = vadd.f32 %v782_v56, %v773_v52  ;;  %v789_v1 = vadd.f32 %v788_v57, %v774_v53 }
  0xaa   : > { %v795_v10 = vadd.f32 %v794_v58, %v775_v54 }
  0xab   : > { %v778_v11 = vrot.slane %v777_v59, 2  ;;  %v784_v26 = vrot.slane %v783_v0, 2  ;;  %v790_v13 = vrot.slane %v789_v1, 2 }
  0xac   : > { %v796_v60 = vrot.slane %v795_v10, 2 }
  0xad   : > { %v779_v62 = vadd.f32 %v778_v11, %v777_v59  ;;  %v785_v63 = vadd.f32 %v784_v26, %v783_v0  ;;  %v791_v2 = vadd.f32 %v790_v13, %v789_v1 }
  0xae   : > { %v797_v3 = vadd.f32 %v796_v60, %v795_v10 }
  0xaf   : > { %v780_v4 = vrot.slane %v779_v62, 1  ;;  %v786_v5 = vrot.slane %v785_v63, 1  ;;  %v792_v15 = vrot.slane %v791_v2, 1 }
  0xb0   : > { %v798_v17 = vrot.slane %v797_v3, 1 }
  0xb1   : > { %v781_v18 = vadd.f32 %v780_v4, %v779_v62  ;;  %v787_v19 = vadd.f32 %v786_v5, %v785_v63  ;;  %v793_v20 = vadd.f32 %v792_v15, %v791_v2 }
  0xb2   : > { %v799_v21 = vadd.f32 %v798_v17, %v797_v3 }
  0xb3   : > { %v810_v12 = vadd.f32 %v809_v16, %v781_v18  ;;  %v811_v29 = vadd.f32 %v809_v16, %v787_v19  ;;  %v812_v22 = vadd.f32 %v809_v16, %v793_v20 }
  0xb4   : > { %v813_v23 = vadd.f32 %v809_v16, %v799_v21 }
  0xb5   : > { %v814_v24 = vsub.f32 0.0, %v810_v12  ;;  %v815_v25 = vsub.f32 0.0, %v811_v29  ;;  %v816_v34 = vsub.f32 0.0, %v812_v22 }
  0xb6   : > { %v817_v35 = vsub.f32 0.0, %v813_v23 }
  0xb7   : > { %v818_v36 = vmul.f32 1.442695, %v814_v24  ;;  %v820_v37 = vmul.f32 1.442695, %v815_v25  ;;  %v822_v6 = vmul.f32 1.442695, %v816_v34 }
  0xb8   : > { %v824_v40 = vmul.f32 1.442695, %v817_v35 }
  0xb9   : > { %1005 = vpow2.f32 %v818_v36 }
  0xba   : > { %1007 = vpow2.f32 %v820_v37 }
  0xbb   : > { %1009 = vpow2.f32 %v822_v6 }
  0xbc   : > { %1011 = vpow2.f32 %v824_v40 }
  0xc3   : > { %v1006_v14 = vpop.eup %1005 }
  0xc4   : > { %v1008_v7 = vpop.eup %1007  ;;  %v826_v41 = vadd.f32 1.0, %v1006_v14 }
  0xc5   : > { %v1010_v8 = vpop.eup %1009  ;;  %v827_v42 = vadd.f32 1.0, %v1008_v7 }
  0xc6   : > { %v1012_v9 = vpop.eup %1011  ;;  %v828_v43 = vadd.f32 1.0, %v1010_v8  ;;  %1013 = vrcp.f32 %v826_v41 }
  0xc7   : > { %v829_v44 = vadd.f32 1.0, %v1012_v9  ;;  %1015 = vrcp.f32 %v827_v42 }
  0xc8   : > { %1017 = vrcp.f32 %v828_v43 }
  0xc9   : > { %1019 = vrcp.f32 %v829_v44 }
  0xd0   : > { %v1014_v45 = vpop.eup %1013 }
  0xd1   : > { %v1016_v46 = vpop.eup %1015 }
  0xd2   : > { %v1018_v27 = vpop.eup %1017  ;;  %v838_v30 = vcombine.low %v1014_v45, %v1016_v46 }
  0xd3   : > { %v1020_v31 = vpop.eup %1019 }
  0xd4   : > { %v839_v28 = vcombine.low %v1018_v27, %v1020_v31  ;;  %v842_v32 = vmul.f32 %v838_v30, %v1152_v38 }
  0xd6   : > { %v843_v33 = vmul.f32 %v839_v28, %v1154_v39  ;;  %844 = vst [vmem:[%s354_s23] sm:$0xff] %v842_v32 }
  0xd8   : > { %845 = vst [vmem:[%s354_s23 + $0x8] sm:$0xff] %v843_v33 }
  0xd9 PF: > { %s19_s28 = sadd.s32 1, %s1043_s28   ;;  %s1246_s26 = smov %s1039_s27 }
  0xda   : > { %p16_p5 = scmp.ge.s32.totalorder %s19_s28, 4   ;;  %s1247_s27 = smov %s1249_s6 }
  0xdc   :  { %18 = sbr.rel (!%p16_p5) target bundleno = 3 (0x3), region = 81 }

</bundles_post_ra>
